<compile_context>
chip_gen: v6e
topology: v6e:2x2x1
jax: 0.10.0
libtpu: 0.0.40
codegen_flags: <defaults>
</compile_context>

<pallas_src>
import jax
import jax.numpy as jnp
from jax.experimental import pallas as pl
from jax.experimental.pallas import tpu as pltpu


IN_F = 784     # 28*28
HID = 128      # hidden width, padded 100 -> 128 (lane-dense)
OUT_P = 128    # output width, padded 10 -> 128 (lane-dense store)
NUM_CLASSES = 10


def mlp_kernel(x_ref, w1_ref, b1_ref, w2_ref, b2_ref, w34_ref, b34_ref, out_ref):
    # x_ref: (TILE_N, 784) f32 (cast to bf16 in-body); weights bf16;
    # biases f32; out (TILE_N, 128) bf16.
    x = x_ref[...].astype(jnp.bfloat16)

    h = jnp.dot(x, w1_ref[...], preferred_element_type=jnp.float32)   # (T, 128)
    h = jnp.maximum(h + b1_ref[...], 0.0)                             # ReLU (f32)

    h = jnp.dot(h.astype(jnp.bfloat16), w2_ref[...],
                preferred_element_type=jnp.float32)                   # (T, 128)
    h = jnp.maximum(h + b2_ref[...], 0.0)                             # ReLU (f32)

    # Fused Linear3+Linear4 (no activation between them in the module).
    logits = jnp.dot(h.astype(jnp.bfloat16), w34_ref[...],
                     preferred_element_type=jnp.float32)              # (T, 128)
    logits = logits + b34_ref[...]            # padded classes biased to -1e30

    # Softmax(dim=1), numerically stable; padded lanes contribute exp(.) == 0.
    m = jnp.max(logits, axis=1, keepdims=True)
    e = jnp.exp(logits - m)
    s = jnp.sum(e, axis=1, keepdims=True)
    out_ref[...] = (e * pl.reciprocal(s, approx=True)).astype(out_ref.dtype)


def _round_up(x, m):
    return ((x + m - 1) // m) * m


def _prepare_operands(params):
    """Fold L3/L4, pad widths to 128 lanes, cast matmul weights to bf16."""
    w1, b1, w2, b2, w3, b3, w4, b4 = params            # w:(in,out), b:(1,out)

    w34 = w3 @ w4                                      # (100, 10)
    b34 = b3 @ w4 + b4                                 # (1, 10)

    pad_w = lambda w, r, c: jnp.pad(
        w, ((0, r - w.shape[0]), (0, c - w.shape[1])))

    w1p = pad_w(w1, IN_F, HID).astype(jnp.bfloat16)            # (784, 128)
    w2p = pad_w(w2, HID, HID).astype(jnp.bfloat16)             # (128, 128)
    w34p = pad_w(w34, HID, OUT_P).astype(jnp.bfloat16)         # (128, 128)

    b1p = jnp.pad(b1, ((0, 0), (0, HID - b1.shape[1]))).astype(jnp.float32)
    b2p = jnp.pad(b2, ((0, 0), (0, HID - b2.shape[1]))).astype(jnp.float32)
    # Padded classes get -1e30 (kept in f32!) so exp(logit - max) underflows
    # to exactly 0 in the in-kernel softmax.
    b34p = jnp.pad(b34, ((0, 0), (0, OUT_P - b34.shape[1])),
                   constant_values=-1e30).astype(jnp.float32)
    return w1p, b1p, w2p, b2p, w34p, b34p


def nn_forward(x_nchw, params, tile_n=1024):
    """x_nchw: (N, 1, 28, 28) float32. Returns (N, 10) f32 softmax probabilities."""
    n = x_nchw.shape[0]
    x_flat = x_nchw.reshape(n, -1).astype(jnp.float32)   # Flatten (host-side glue)
    assert x_flat.shape[1] == IN_F

    # Batch tile: multiple of 16 sublanes (bf16 packing), at most `tile_n`,
    # and clamped so the grid keeps >= 2 steps when the batch allows it
    # (lets dimension_semantics=("parallel",) feed both v7x TensorCores).
    tile_n = max(16, min(tile_n, _round_up(n, 16)))
    if n > 16:
        tile_n = min(tile_n, _round_up((n + 1) // 2, 16))
    n_pad = _round_up(n, tile_n)
    grid_n = n_pad // tile_n

    # No wrapper-side dtype cast: x stays f32 and is cast to bf16 in-kernel.
    x_pad = jnp.pad(x_flat, ((0, n_pad - n), (0, 0)))
    w1p, b1p, w2p, b2p, w34p, b34p = _prepare_operands(params)

    out = pl.pallas_call(
        mlp_kernel,
        out_shape=jax.ShapeDtypeStruct((n_pad, OUT_P), jnp.bfloat16),
        grid_spec=pltpu.PrefetchScalarGridSpec(
            num_scalar_prefetch=0,
            grid=(grid_n,),
            in_specs=[
                pl.BlockSpec((tile_n, IN_F), lambda i: (i, 0)),   # x tile (f32)
                pl.BlockSpec((IN_F, HID), lambda i: (0, 0)),      # W1 (resident)
                pl.BlockSpec((1, HID), lambda i: (0, 0)),         # b1
                pl.BlockSpec((HID, HID), lambda i: (0, 0)),       # W2
                pl.BlockSpec((1, HID), lambda i: (0, 0)),         # b2
                pl.BlockSpec((HID, OUT_P), lambda i: (0, 0)),     # W34 (fused)
                pl.BlockSpec((1, OUT_P), lambda i: (0, 0)),       # b34
            ],
            out_specs=pl.BlockSpec((tile_n, OUT_P), lambda i: (i, 0)),
        ),
        compiler_params=pltpu.CompilerParams(
            dimension_semantics=("parallel",),   # megacore sharding on v7x
        ),
    )(x_pad, w1p, b1p, w2p, b2p, w34p, b34p)

    # Tiny (n, 10) slice; upcast back to f32 for downstream consumers.
    return out[:n, :NUM_CLASSES].astype(jnp.float32)


def init_params(key):
    """Deterministic init mirroring nn.Linear's U(-1/sqrt(fan_in), 1/sqrt(fan_in))."""
    dims = [(784, 100), (100, 100), (100, 100), (100, 10)]
    params = []
    for i, (fan_in, fan_out) in enumerate(dims):
        kw, kb = jax.random.split(jax.random.fold_in(key, i))
        bound = 1.0 / (fan_in ** 0.5)
        w = jax.random.uniform(kw, (fan_in, fan_out), jnp.float32, -bound, bound)
        b = jax.random.uniform(kb, (1, fan_out), jnp.float32, -bound, bound)
        params += [w, b]
    return tuple(params)


def _reference(x_nchw, params):
    """Pure f32, unfused module semantics."""
    w1, b1, w2, b2, w3, b3, w4, b4 = params
    x = x_nchw.reshape(x_nchw.shape[0], -1)
    h = jnp.maximum(x @ w1 + b1, 0.0)
    h = jnp.maximum(h @ w2 + b2, 0.0)
    h = h @ w3 + b3
    logits = h @ w4 + b4
    return jax.nn.softmax(logits, axis=1)


if __name__ == "__main__":
    key = jax.random.PRNGKey(0)
    kx, kp = jax.random.split(key)
    params = init_params(kp)

    # MNIST-like input implied by in_features=784: (N, 1, 28, 28)
    for n in (8, 20):  # 20 exercises batch padding + the 2-step grid path
        x = jax.random.normal(jax.random.fold_in(kx, n), (n, 1, 28, 28),
                              jnp.float32)
        out = jax.block_until_ready(nn_forward(x, params))
        ref = _reference(x, params)

        assert out.shape == (n, NUM_CLASSES)
        # bf16 matmul inputs/output + approx reciprocal -> loose-but-bug-catching tols.
        assert jnp.allclose(jnp.sum(out, axis=1), 1.0, atol=2e-2)
        assert jnp.allclose(out, ref, atol=2e-2), float(jnp.abs(out - ref).max())

    print("KERNEL_OK")
</pallas_src>

<mosaic_0001>
module attributes {stable_mosaic.version = 11 : i64} {
  func.func @mlp_kernel(%arg0: i32, %arg1: memref<16x784xf32, #tpu.memory_space<vmem>>, %arg2: memref<784x128xbf16, #tpu.memory_space<vmem>>, %arg3: memref<1x128xf32, #tpu.memory_space<vmem>>, %arg4: memref<128x128xbf16, #tpu.memory_space<vmem>>, %arg5: memref<1x128xf32, #tpu.memory_space<vmem>>, %arg6: memref<128x128xbf16, #tpu.memory_space<vmem>>, %arg7: memref<1x128xf32, #tpu.memory_space<vmem>>, %arg8: memref<16x128xbf16, #tpu.memory_space<vmem>>) attributes {dimension_semantics = [#tpu.dimension_semantics<parallel>], iteration_bounds = array<i64: 1>, scalar_prefetch = 0 : i64, scratch_operands = 0 : i64, tpu.core_type = #tpu.core_type<tc>, window_params = [{transform_indices = @transform_0, window_bounds = array<i64: 16, 784>}, {pipeline_mode = #tpu.pipeline_mode<synchronous>, transform_indices = @transform_1, window_bounds = array<i64: 784, 128>}, {pipeline_mode = #tpu.pipeline_mode<synchronous>, transform_indices = @transform_2, window_bounds = array<i64: 1, 128>}, {pipeline_mode = #tpu.pipeline_mode<synchronous>, transform_indices = @transform_3, window_bounds = array<i64: 128, 128>}, {pipeline_mode = #tpu.pipeline_mode<synchronous>, transform_indices = @transform_4, window_bounds = array<i64: 1, 128>}, {pipeline_mode = #tpu.pipeline_mode<synchronous>, transform_indices = @transform_5, window_bounds = array<i64: 128, 128>}, {pipeline_mode = #tpu.pipeline_mode<synchronous>, transform_indices = @transform_6, window_bounds = array<i64: 1, 128>}, {transform_indices = @transform_7, window_bounds = array<i64: 16, 128>}]} {
    %c0 = arith.constant 0 : index
    %c0_0 = arith.constant 0 : index
    %0 = vector.load %arg1[%c0, %c0_0] : memref<16x784xf32, #tpu.memory_space<vmem>>, vector<16x784xf32>
    %1 = arith.truncf %0 : vector<16x784xf32> to vector<16x784xbf16>
    %c0_1 = arith.constant 0 : index
    %c0_2 = arith.constant 0 : index
    %2 = vector.load %arg2[%c0_1, %c0_2] : memref<784x128xbf16, #tpu.memory_space<vmem>>, vector<784x128xbf16>
    %cst = arith.constant dense<0.000000e+00> : vector<16x128xf32>
    %3 = tpu.matmul %1, %2, %cst {dimension_numbers = #tpu.dot_dimension_numbers<[1], [0], [0], [1], [0, 0, 1, 1], [], []>} : vector<16x784xbf16>, vector<784x128xbf16>, vector<16x128xf32> -> vector<16x128xf32>
    %c0_3 = arith.constant 0 : index
    %c0_4 = arith.constant 0 : index
    %4 = vector.load %arg3[%c0_3, %c0_4] : memref<1x128xf32, #tpu.memory_space<vmem>>, vector<1x128xf32>
    %5 = vector.broadcast %4 : vector<1x128xf32> to vector<16x128xf32>
    %6 = arith.addf %3, %5 : vector<16x128xf32>
    %cst_5 = arith.constant 0.000000e+00 : f32
    %7 = vector.broadcast %cst_5 : f32 to vector<16x128xf32>
    %8 = arith.maximumf %6, %7 : vector<16x128xf32>
    %9 = arith.truncf %8 : vector<16x128xf32> to vector<16x128xbf16>
    %c0_6 = arith.constant 0 : index
    %c0_7 = arith.constant 0 : index
    %10 = vector.load %arg4[%c0_6, %c0_7] : memref<128x128xbf16, #tpu.memory_space<vmem>>, vector<128x128xbf16>
    %cst_8 = arith.constant dense<0.000000e+00> : vector<16x128xf32>
    %11 = tpu.matmul %9, %10, %cst_8 {dimension_numbers = #tpu.dot_dimension_numbers<[1], [0], [0], [1], [0, 0, 1, 1], [], []>} : vector<16x128xbf16>, vector<128x128xbf16>, vector<16x128xf32> -> vector<16x128xf32>
    %c0_9 = arith.constant 0 : index
    %c0_10 = arith.constant 0 : index
    %12 = vector.load %arg5[%c0_9, %c0_10] : memref<1x128xf32, #tpu.memory_space<vmem>>, vector<1x128xf32>
    %13 = vector.broadcast %12 : vector<1x128xf32> to vector<16x128xf32>
    %14 = arith.addf %11, %13 : vector<16x128xf32>
    %cst_11 = arith.constant 0.000000e+00 : f32
    %15 = vector.broadcast %cst_11 : f32 to vector<16x128xf32>
    %16 = arith.maximumf %14, %15 : vector<16x128xf32>
    %17 = arith.truncf %16 : vector<16x128xf32> to vector<16x128xbf16>
    %c0_12 = arith.constant 0 : index
    %c0_13 = arith.constant 0 : index
    %18 = vector.load %arg6[%c0_12, %c0_13] : memref<128x128xbf16, #tpu.memory_space<vmem>>, vector<128x128xbf16>
    %cst_14 = arith.constant dense<0.000000e+00> : vector<16x128xf32>
    %19 = tpu.matmul %17, %18, %cst_14 {dimension_numbers = #tpu.dot_dimension_numbers<[1], [0], [0], [1], [0, 0, 1, 1], [], []>} : vector<16x128xbf16>, vector<128x128xbf16>, vector<16x128xf32> -> vector<16x128xf32>
    %c0_15 = arith.constant 0 : index
    %c0_16 = arith.constant 0 : index
    %20 = vector.load %arg7[%c0_15, %c0_16] : memref<1x128xf32, #tpu.memory_space<vmem>>, vector<1x128xf32>
    %21 = vector.broadcast %20 : vector<1x128xf32> to vector<16x128xf32>
    %22 = arith.addf %19, %21 : vector<16x128xf32>
    %cst_17 = arith.constant dense<0xFF800000> : vector<16xf32>
    %23 = vector.multi_reduction <maximumf>, %22, %cst_17 [1] : vector<16x128xf32> to vector<16xf32>
    %24 = vector.shape_cast %23 : vector<16xf32> to vector<16x1xf32>
    %25 = vector.broadcast %24 : vector<16x1xf32> to vector<16x128xf32>
    %26 = arith.subf %22, %25 : vector<16x128xf32>
    %27 = math.exp %26 : vector<16x128xf32>
    %cst_18 = arith.constant dense<0.000000e+00> : vector<16xf32>
    %28 = vector.multi_reduction <add>, %27, %cst_18 [1] : vector<16x128xf32> to vector<16xf32>
    %29 = vector.shape_cast %28 : vector<16xf32> to vector<16x1xf32>
    %30 = tpu.reciprocal %29 {approx = true} : vector<16x1xf32> -> vector<16x1xf32>
    %31 = vector.broadcast %30 : vector<16x1xf32> to vector<16x128xf32>
    %32 = arith.mulf %27, %31 : vector<16x128xf32>
    %33 = arith.truncf %32 : vector<16x128xf32> to vector<16x128xbf16>
    %c0_19 = arith.constant 0 : index
    %c0_20 = arith.constant 0 : index
    %34 = vector.load %arg8[%c0_19, %c0_20] : memref<16x128xbf16, #tpu.memory_space<vmem>>, vector<16x128xbf16>
    tpu.vector_store %arg8[%c0_19, %c0_20], %33 {strides = array<i32>} : memref<16x128xbf16, #tpu.memory_space<vmem>>, vector<16x128xbf16>,
    return
  }
  func.func @transform_0(%arg0: i32) -> (i32, i32) {
    %c0_i32 = arith.constant 0 : i32
    %c0_i32_0 = arith.constant 0 : i32
    return %arg0, %c0_i32 : i32, i32
  }
  func.func @transform_1(%arg0: i32) -> (i32, i32) {
    %c0_i32 = arith.constant 0 : i32
    %c0_i32_0 = arith.constant 0 : i32
    %c0_i32_1 = arith.constant 0 : i32
    return %c0_i32, %c0_i32_0 : i32, i32
  }
  func.func @transform_2(%arg0: i32) -> (i32, i32) {
    %c0_i32 = arith.constant 0 : i32
    %c0_i32_0 = arith.constant 0 : i32
    %c0_i32_1 = arith.constant 0 : i32
    return %c0_i32, %c0_i32_0 : i32, i32
  }
  func.func @transform_3(%arg0: i32) -> (i32, i32) {
    %c0_i32 = arith.constant 0 : i32
    %c0_i32_0 = arith.constant 0 : i32
    %c0_i32_1 = arith.constant 0 : i32
    return %c0_i32, %c0_i32_0 : i32, i32
  }
  func.func @transform_4(%arg0: i32) -> (i32, i32) {
    %c0_i32 = arith.constant 0 : i32
    %c0_i32_0 = arith.constant 0 : i32
    %c0_i32_1 = arith.constant 0 : i32
    return %c0_i32, %c0_i32_0 : i32, i32
  }
  func.func @transform_5(%arg0: i32) -> (i32, i32) {
    %c0_i32 = arith.constant 0 : i32
    %c0_i32_0 = arith.constant 0 : i32
    %c0_i32_1 = arith.constant 0 : i32
    return %c0_i32, %c0_i32_0 : i32, i32
  }
  func.func @transform_6(%arg0: i32) -> (i32, i32) {
    %c0_i32 = arith.constant 0 : i32
    %c0_i32_0 = arith.constant 0 : i32
    %c0_i32_1 = arith.constant 0 : i32
    return %c0_i32, %c0_i32_0 : i32, i32
  }
  func.func @transform_7(%arg0: i32) -> (i32, i32) {
    %c0_i32 = arith.constant 0 : i32
    %c0_i32_0 = arith.constant 0 : i32
    return %arg0, %c0_i32 : i32, i32
  }
}

</mosaic_0001>

<bundles_post_ra>
// kernel: tpu_custom_call.1
= control target key start
LH: loop header
LB: loop body
LE: loop exit
PB: predicated region body
PF: predicated region fallthrough
CT: control target
= control target key end

     0   :  { %12 = vsyncpa [#allocation3], 0  ;;  %s1460_s0 = inlined_call_operand.hbm [shape: f32[16,784], index: 0, kind: input, shape index: {}]   ;;  %s1461_s1 = inlined_call_operand.hbm [shape: bf16[784,128], index: 1, kind: input, shape index: {}]   ;;  %s1462_s2 = inlined_call_operand.vmem [shape: f32[1,128], index: 2, kind: input, shape index: {}]   ;;  %s1463_s3 = inlined_call_operand.hbm [shape: bf16[128,128], index: 3, kind: input, shape index: {}]   ;;  %s1464_s4 = inlined_call_operand.vmem [shape: f32[1,128], index: 4, kind: input, shape index: {}]   ;;  %s1465_s5 = inlined_call_operand.hbm [shape: bf16[128,128], index: 5, kind: input, shape index: {}]   ;;  %s1466_s6 = inlined_call_operand.vmem [shape: f32[1,128], index: 6, kind: input, shape index: {}]   ;;  %s1467_s7 = inlined_call_operand.hbm [shape: bf16[16,128], index: 7, kind: output, shape index: {}]  }
   0x1   :  { %13 = vsyncpa [#allocation6], 0 }
   0x2   :  { %14 = vsyncpa [#allocation9], 0 }
   0x3   :  { %15 = vsyncpa [#allocation4], 0  ;;  %s1350_s24 = smov [#allocation5]  }
   0x4   :  { %s33_s25 = sshll.u32 %s1350_s24, 4  ;;  %s34_s25 = int_to_ptr.vmem [resolvable:$true] %s33_s25 }
   0x5   :  { %s1250_s26 = scalar_lea.vmem %s34_s25, 6272  ;;  %p1255_p1 = scmp.lt.s32.totalorder %s34_s25, %s34_s25 }
   0x6   :  { %p1251_p0 = scmp.ne.s32.totalorder %s34_s25, %s1250_s26  ;;  %p1256_p2 = scmp.lt.s32.totalorder %s1250_s26, %s1250_s26 }
   0x8   :  { %p1257_p3 = por %p1256_p2, %p1255_p1 }
   0xa   :  { %p1258_p4 = pnand %p1257_p3, %p1251_p0 }
   0xc   :  { %1261 = shalt.err (!%p1258_p4)
}
   0xd   :  { %s1351_s27 = smov 64   ;;  %s1352_s28 = smov 4  }
   0xe   :  { %39 = dma.hbm_to_vmem [thread:$0]  %s1461_s1, 6272, %s34_s25, [#allocation6], %s1351_s27, %s1351_s27, %s1352_s28  }
   0xf   :  { %s1353_s8 = smov [#allocation2]  }
  0x10   :  { %s21_s9 = sshll.u32 %s1353_s8, 4  ;;  %s22_s9 = int_to_ptr.vmem [resolvable:$true] %s21_s9 }
  0x11   :  { %s1270_s10 = scalar_lea.vmem %s22_s9, 1792  ;;  %p1275_p6 = scmp.lt.s32.totalorder %s22_s9, %s22_s9 }
  0x12   :  { %p1271_p5 = scmp.ne.s32.totalorder %s22_s9, %s1270_s10  ;;  %p1276_p7 = scmp.lt.s32.totalorder %s1270_s10, %s1270_s10 }
  0x14   :  { %p1277_p8 = por %p1276_p7, %p1275_p6 }
  0x16   :  { %p1278_p9 = pnand %p1277_p8, %p1271_p5 }
  0x18   :  { %1281 = shalt.err (!%p1278_p9)
}
  0x19   :  { %s1354_s11 = smov 896   ;;  %s1355_s12 = smov 56  }
  0x1a   :  { %27 = dma.hbm_to_vmem [thread:$0]  %s1460_s0, 1792, %s22_s9, [#allocation3], %s1354_s11, %s1354_s11, %s1355_s12  }
  0x1b   :  { %s1356_s15 = smov [#allocation7]   ;;  %s1357_s17 = smov [#allocation8]  }
  0x1c   :  { %s47_s16 = sshll.u32 %s1356_s15, 4  ;;  %s61_s1 = sshll.u32 %s1357_s17, 4  ;;  %s48_s16 = int_to_ptr.vmem [resolvable:$true] %s47_s16  ;;  %s62_s1 = int_to_ptr.vmem [resolvable:$true] %s61_s1 }
  0x1d   :  { %s1290_s18 = scalar_lea.vmem %s48_s16, 1024  ;;  %p1295_p11 = scmp.lt.s32.totalorder %s48_s16, %s48_s16 }
  0x1e   :  { %p1291_p10 = scmp.ne.s32.totalorder %s48_s16, %s1290_s18  ;;  %p1296_p12 = scmp.lt.s32.totalorder %s1290_s18, %s1290_s18 }
  0x20   :  { %p1297_p13 = por %p1296_p12, %p1295_p11 }
  0x22   :  { %p1298_p0 = pnand %p1297_p13, %p1291_p10 }
  0x24   :  { %1301 = shalt.err (!%p1298_p0)
}
  0x25   :  { %53 = dma.hbm_to_vmem [thread:$0]  %s1463_s3, 1024, %s48_s16, [#allocation6], %s1351_s27, %s1351_s27, %s1352_s28  }
  0x26   :  { %s1310_s0 = scalar_lea.vmem %s62_s1, 1024  ;;  %p1315_p2 = scmp.lt.s32.totalorder %s62_s1, %s62_s1 }
  0x27   :  { %p1311_p1 = scmp.ne.s32.totalorder %s62_s1, %s1310_s0  ;;  %p1316_p3 = scmp.lt.s32.totalorder %s1310_s0, %s1310_s0 }
  0x29   :  { %p1317_p4 = por %p1316_p3, %p1315_p2 }
  0x2b   :  { %p1318_p5 = pnand %p1317_p4, %p1311_p1 }
  0x2d   :  { %1321 = shalt.err (!%p1318_p5)
}
  0x2e   :  { %67 = dma.hbm_to_vmem [thread:$0]  %s1465_s5, 1024, %s62_s1, [#allocation9], %s1351_s27, %s1351_s27, %s1352_s28  }
  0x2f   :  { %1342 = dma.done.wait [#allocation3], 1792  }
  0x30   :  { %1343 = vsyncadd [#allocation3], 4294965504 }
  0x31   :  { %1344 = dma.done.wait [#allocation6], 7296  }
  0x32   :  { %1345 = vsyncadd [#allocation6], 4294960000 }
  0x33   :  { %1346 = dma.done.wait [#allocation9], 1024  }
  0x34   :  { %1347 = vsyncadd [#allocation9], 4294966272  ;;  %v1169_v0 = vld [vmem:[#allocation5 + $0x78] sm:$0xff]   ;;  %v1173_v4 = vld [vmem:[#allocation5 + $0x70] sm:$0xff]   ;;  %v1358_v43 = vmov 0.0   ;;  %vm1359_vm0 = vmmov 0  }
  0x35   :  { %v1170_v1 = vld [vmem:[#allocation5 + $0x38] sm:$0xff]   ;;  %1026 = vmatprep.subr.bf16.mxu0 %v1169_v0  ;;  %v1174_v5 = vld [vmem:[#allocation5 + $0x30] sm:$0xff]   ;;  %v1177_v8 = vld [vmem:[#allocation5 + $0x68] sm:$0xff]   ;;  %vm503_vm1 = vcmask 130048  }
  0x36   :  { %v1171_v2 = vld [vmem:[#allocation5 + $0xf8] sm:$0xff]   ;;  %1027 = vmatpush3.bf16.msra.mxu0 %v1170_v1  ;;  %v1175_v6 = vld [vmem:[#allocation5 + $0xf0] sm:$0xff]   ;;  %v1178_v9 = vld [vmem:[#allocation5 + $0x28] sm:$0xff]  }
  0x37   :  { %v1172_v3 = vld [vmem:[#allocation5 + $0xb8] sm:$0xff]   ;;  %1048 = vmatprep.subr.bf16.mxu1 %v1171_v2  ;;  %1028 = vmatprep.subr.bf16.mxu0 %v1173_v4  ;;  %v1176_v7 = vld [vmem:[#allocation5 + $0xb0] sm:$0xff]   ;;  %v1179_v10 = vld [vmem:[#allocation5 + $0xe8] sm:$0xff]  }
  0x38   :  { %1049 = vmatpush3.bf16.msra.mxu1 %v1172_v3  ;;  %v1180_v11 = vld [vmem:[#allocation5 + $0xa8] sm:$0xff]   ;;  %v1181_v12 = vld [vmem:[#allocation5 + $0x60] sm:$0xff]   ;;  %v1185_v16 = vld [vmem:[#allocation5 + $0x58] sm:$0xff]  }
  0x39   :  { %1050 = vmatprep.subr.bf16.mxu1 %v1175_v6  ;;  %v1182_v13 = vld [vmem:[#allocation5 + $0x20] sm:$0xff]   ;;  %v1186_v17 = vld [vmem:[#allocation5 + $0x18] sm:$0xff]   ;;  %v1189_v20 = vld [vmem:[#allocation5 + $0x50] sm:$0xff]  }
  0x3a   :  { %1029 = vmatpush3.bf16.msra.mxu0 %v1174_v5  ;;  %v1183_v14 = vld [vmem:[#allocation5 + $0xe0] sm:$0xff]   ;;  %v1187_v18 = vld [vmem:[#allocation5 + $0xd8] sm:$0xff]   ;;  %v1190_v21 = vld [vmem:[#allocation5 + $0x10] sm:$0xff]  }
  0x3b   :  { %1030 = vmatprep.subr.bf16.mxu0 %v1177_v8  ;;  %v1184_v15 = vld [vmem:[#allocation5 + $0xa0] sm:$0xff]   ;;  %v1188_v19 = vld [vmem:[#allocation5 + $0x98] sm:$0xff]   ;;  %v1191_v22 = vld [vmem:[#allocation5 + $0xd0] sm:$0xff]  }
  0x3c   :  { %1051 = vmatpush3.bf16.msra.mxu1 %v1176_v7  ;;  %v1192_v23 = vld [vmem:[#allocation5 + $0x90] sm:$0xff]   ;;  %v1193_v24 = vld [vmem:[#allocation5 + $0x48] sm:$0xff]   ;;  %v1197_v28 = vld [vmem:[#allocation5 + $0x40] sm:$0xff]  }
  0x3d   :  { %1052 = vmatprep.subr.bf16.mxu1 %v1179_v10  ;;  %v1194_v25 = vld [vmem:[#allocation5 + $0x8] sm:$0xff]   ;;  %v1198_v29 = vld [vmem:[#allocation5] sm:$0xff]   ;;  %v84_v31 = vld [vmem:[#allocation2 + $0x8] sm:$0xff] }
  0x3e   :  { %1031 = vmatpush3.bf16.msra.mxu0 %v1178_v9  ;;  %v1195_v26 = vld [vmem:[#allocation5 + $0xc8] sm:$0xff]   ;;  %v1199_v30 = vld [vmem:[#allocation5 + $0xc0] sm:$0xff]   ;;  %v91_v32 = vld [vmem:[#allocation2 + $0x40] sm:$0xff] }
  0x3f   :  { %1032 = vmatprep.subr.bf16.mxu0 %v1181_v12  ;;  %v1196_v27 = vld [vmem:[#allocation5 + $0x88] sm:$0xff]   ;;  %v98_v33 = vpack.c.bf16 %v91_v32, %v84_v31  ;;  %v1200_v34 = vld [vmem:[#allocation5 + $0x80] sm:$0xff]   ;;  %v83_v35 = vld [vmem:[#allocation2] sm:$0xff] }
  0x40   :  { %1053 = vmatpush3.bf16.msra.mxu1 %v1180_v11  ;;  %v90_v36 = vld [vmem:[#allocation2 + $0x38] sm:$0xff]  ;;  %v1201_v38 = vld [vmem:[#allocation5 + $0x178] sm:$0xff]   ;;  %v93_v40 = vld [vmem:[#allocation2 + $0x50] sm:$0xff] }
  0x41   :  { %1054 = vmatprep.subr.bf16.mxu1 %v1183_v14  ;;  %539 = vmatprep.mubr.bf16.mxu0 %v98_v33  ;;  %v97_v37 = vpack.c.bf16 %v90_v36, %v83_v35  ;;  %v86_v39 = vld [vmem:[#allocation2 + $0x18] sm:$0xff]  ;;  %v1202_v42 = vld [vmem:[#allocation5 + $0x138] sm:$0xff]   ;;  %v85_v44 = vld [vmem:[#allocation2 + $0x10] sm:$0xff] }
  0x42   :  { %1033 = vmatpush3.bf16.msra.mxu0 %v1182_v13  ;;  %v100_v41 = vpack.c.bf16 %v93_v40, %v86_v39  ;;  %v92_v45 = vld [vmem:[#allocation2 + $0x48] sm:$0xff]  ;;  %v1203_v47 = vld [vmem:[#allocation5 + $0x170] sm:$0xff]   ;;  %v1205_v49 = vld [vmem:[#allocation5 + $0x168] sm:$0xff]  }
  0x43   :  { %1034 = vmatprep.subr.bf16.mxu0 %v1185_v16  ;;  %v99_v46 = vpack.c.bf16 %v92_v45, %v85_v44  ;;  %v1204_v48 = vld [vmem:[#allocation5 + $0x130] sm:$0xff]   ;;  %v1206_v50 = vld [vmem:[#allocation5 + $0x128] sm:$0xff]   ;;  %v1207_v51 = vld [vmem:[#allocation5 + $0x160] sm:$0xff]  }
  0x44   :  { %1055 = vmatpush3.bf16.msra.mxu1 %v1184_v15  ;;  %580 = vmatprep.mubr.bf16.mxu1 %v100_v41  ;;  %v1208_v52 = vld [vmem:[#allocation5 + $0x120] sm:$0xff]   ;;  %v1209_v53 = vld [vmem:[#allocation5 + $0x158] sm:$0xff]   ;;  %v1211_v55 = vld [vmem:[#allocation5 + $0x150] sm:$0xff]  }
  0x45   :  { %1056 = vmatprep.subr.bf16.mxu1 %v1187_v18  ;;  %v1210_v54 = vld [vmem:[#allocation5 + $0x118] sm:$0xff]   ;;  %v1217_v56 = vld [vmem:[#allocation5 + $0x180] sm:$0xff]   ;;  %v1212_v58 = vld [vmem:[#allocation5 + $0x110] sm:$0xff]  }
  0x46   :  { %1035 = vmatpush3.bf16.msra.mxu0 %v1186_v17  ;;  %v88_v57 = vld [vmem:[#allocation2 + $0x28] sm:$0xff]  ;;  %v1213_v59 = vld [vmem:[#allocation5 + $0x148] sm:$0xff]   ;;  %v95_v60 = vld [vmem:[#allocation2 + $0x60] sm:$0xff] }
  0x47   :  { %1036 = vmatprep.subr.bf16.mxu0 %v1189_v20  ;;  %v102_v61 = vpack.c.bf16 %v95_v60, %v88_v57  ;;  %v89_v62 = vld [vmem:[#allocation2 + $0x30] sm:$0xff]  ;;  %v96_v63 = vld [vmem:[#allocation2 + $0x68] sm:$0xff]  ;;  %v1214_v1 = vld [vmem:[#allocation5 + $0x108] sm:$0xff]  }
  0x48   :  { %1057 = vmatpush3.bf16.msra.mxu1 %v1188_v19  ;;  %v103_v0 = vpack.c.bf16 %v96_v63, %v89_v62  ;;  %v1215_v2 = vld [vmem:[#allocation5 + $0x140] sm:$0xff]   ;;  %v87_v4 = vld [vmem:[#allocation2 + $0x20] sm:$0xff]  ;;  %v94_v5 = vld [vmem:[#allocation2 + $0x58] sm:$0xff] }
  0x49   :  { %1058 = vmatprep.subr.bf16.mxu1 %v1191_v22  ;;  %v1216_v3 = vld [vmem:[#allocation5 + $0x100] sm:$0xff]   ;;  %v101_v6 = vpack.c.bf16 %v94_v5, %v87_v4  ;;  %v1219_v8 = vld [vmem:[#allocation7 + $0x30] sm:$0xff]   ;;  %v1220_v9 = vld [vmem:[#allocation7 + $0x28] sm:$0xff]  }
  0x4a   :  { %1037 = vmatpush3.bf16.msra.mxu0 %v1190_v21  ;;  %v1218_v7 = vld [vmem:[#allocation7 + $0x38] sm:$0xff]   ;;  %v1221_v10 = vld [vmem:[#allocation7 + $0x20] sm:$0xff]   ;;  %v1223_v12 = vld [vmem:[#allocation7 + $0x10] sm:$0xff]  }
  0x4b   :  { %1038 = vmatprep.subr.bf16.mxu0 %v1193_v24  ;;  %v1222_v11 = vld [vmem:[#allocation7 + $0x18] sm:$0xff]   ;;  %v1224_v13 = vld [vmem:[#allocation7 + $0x8] sm:$0xff]   ;;  %v1225_v14 = vld [vmem:[#allocation7] sm:$0xff]  }
  0x4c   :  { %1059 = vmatpush3.bf16.msra.mxu1 %v1192_v23  ;;  %v1226_v15 = vld [vmem:[#allocation8 + $0x38] sm:$0xff]   ;;  %v1227_v16 = vld [vmem:[#allocation8 + $0x30] sm:$0xff]   ;;  %v1228_v17 = vld [vmem:[#allocation8 + $0x28] sm:$0xff]  }
  0x4d   :  { %1060 = vmatprep.subr.bf16.mxu1 %v1195_v26  ;;  %v1229_v18 = vld [vmem:[#allocation8 + $0x20] sm:$0xff]   ;;  %v1230_v19 = vld [vmem:[#allocation8 + $0x18] sm:$0xff]   ;;  %v948_v32 = vld [vmem:[%s1462_s2] ss:$0 sm:$0xff] }
  0x4e   :  { %1039 = vmatpush3.bf16.msra.mxu0 %v1194_v25  ;;  %v1233_v57 = vld [vmem:[#allocation8] sm:$0xff]  }
  0x4f   :  { %1040 = vmatprep.subr.bf16.mxu0 %v1197_v28 }
  0x50   :  { %1061 = vmatpush3.bf16.msra.mxu1 %v1196_v27 }
  0x51   :  { %1062 = vmatprep.subr.bf16.mxu1 %v1199_v30 }
  0x52   :  { %1041 = vmatpush3.bf16.msra.mxu0 %v1198_v29 }
  0x53   :  { %1070 = vmatprep.subr.bf16.mxu0 %v1201_v38 }
  0x54   :  { %1063 = vmatpush3.bf16.msra.mxu1 %v1200_v34 }
  0x55   :  { %1112 = vmatprep.subr.bf16.mxu1 %v1358_v43  ;;  %540 = vmatmul.mubr.bf16.vlgmr.msra.gmra.mxu0 %v97_v37 }
  0x56   :  { %1071 = vmatpush3.bf16.msra.mxu0 %v1202_v42  ;;  %621 = vmatprep.mubr.bf16.mxu0 %v102_v61 }
  0x57   :  { %581 = vmatmul.mubr.bf16.vlgmr.msra.gmra.mxu1 %v99_v46  ;;  %1072 = vmatprep.subr.bf16.mxu0 %v1203_v47 }
  0x58   :  { %1114 = vmatprep.mubr.msk.bf16.mxu1 %vm1359_vm0, %v1358_v43  ;;  %1113 = vmatpush3.bf16.msra.mxu1 %v1217_v56  ;;  %v1232_v56 = vld [vmem:[#allocation8 + $0x8] sm:$0xff]  }
  0x59   :  { %1118 = vmatprep.subr.bf16.mxu1 %v1358_v43 }
  0x5a   :  { %1073 = vmatpush3.bf16.msra.mxu0 %v1204_v48 }
  0x5b   :  { %1074 = vmatprep.subr.bf16.mxu0 %v1205_v49 }
  0x5e   :  { %1075 = vmatpush3.bf16.msra.mxu0 %v1206_v50 }
  0x5f   :  { %1076 = vmatprep.subr.bf16.mxu0 %v1207_v51  ;;  %1115 = vmatmul.mubr.msk.bf16.vlgmr.msra.gmra.mxu1 %vm503_vm1, %v103_v0 }
  0x60   :  { %1134 = vmatprep.mubr.msk.bf16.mxu1 %vm1359_vm0, %v1358_v43  ;;  %1119 = vmatpush3.bf16.msra.mxu1 %v1218_v7 }
  0x61   :  { %1120 = vmatprep.subr.bf16.mxu1 %v1358_v43 }
  0x62   :  { %1077 = vmatpush3.bf16.msra.mxu0 %v1208_v52 }
  0x63   :  { %1078 = vmatprep.subr.bf16.mxu0 %v1209_v53 }
  0x64   :  { %1121 = vmatpush3.bf16.msra.mxu1 %v1219_v8 }
  0x65   :  { %1122 = vmatprep.subr.bf16.mxu1 %v1358_v43 }
  0x66   :  { %1079 = vmatpush3.bf16.msra.mxu0 %v1210_v54 }
  0x67   :  { %1080 = vmatprep.subr.bf16.mxu0 %v1211_v55  ;;  %v1231_v55 = vld [vmem:[#allocation8 + $0x10] sm:$0xff]  }
  0x68   :  { %1123 = vmatpush3.bf16.msra.mxu1 %v1220_v9 }
  0x69   :  { %1124 = vmatprep.subr.bf16.mxu1 %v1358_v43 }
  0x6a   :  { %1081 = vmatpush3.bf16.msra.mxu0 %v1212_v58  ;;  %v999_v58 = vld [vmem:[%s1464_s4] ss:$0 sm:$0xff]  ;;  %s1360_s4 = smov [#allocation10]  }
  0x6b   :  { %1082 = vmatprep.subr.bf16.mxu0 %v1213_v59 }
  0x6c   :  { %1125 = vmatpush3.bf16.msra.mxu1 %v1221_v10 }
  0x6d   :  { %1126 = vmatprep.subr.bf16.mxu1 %v1358_v43 }
  0x6e   :  { %1083 = vmatpush3.bf16.msra.mxu0 %v1214_v1 }
  0x6f   :  { %1084 = vmatprep.subr.bf16.mxu0 %v1215_v2 }
  0x70   :  { %1127 = vmatpush3.bf16.msra.mxu1 %v1222_v11 }
  0x71   :  { %1128 = vmatprep.subr.bf16.mxu1 %v1358_v43 }
  0x72   :  { %1085 = vmatpush3.bf16.msra.mxu0 %v1216_v3 }
  0x73   :  { %1138 = vmatprep.subr.bf16.mxu0 %v1358_v43 }
  0x74   :  { %1129 = vmatpush3.bf16.msra.mxu1 %v1223_v12 }
  0x75   :  { %622 = vmatmul.mubr.bf16.vlgmr.msra.gmra.mxu0 %v101_v6  ;;  %1130 = vmatprep.subr.bf16.mxu1 %v1358_v43 }
  0x76   :  { %1154 = vmatprep.mubr.msk.bf16.mxu0 %vm1359_vm0, %v1358_v43  ;;  %1139 = vmatpush3.bf16.msra.mxu0 %v1226_v15 }
  0x77   :  { %1140 = vmatprep.subr.bf16.mxu0 %v1358_v43 }
  0x78   :  { %1131 = vmatpush3.bf16.msra.mxu1 %v1224_v13 }
  0x79   :  { %1132 = vmatprep.subr.bf16.mxu1 %v1358_v43 }
  0x7a   :  { %1141 = vmatpush3.bf16.msra.mxu0 %v1227_v16 }
  0x7b   :  { %1142 = vmatprep.subr.bf16.mxu0 %v1358_v43 }
  0x7c   :  { %1133 = vmatpush3.bf16.msra.mxu1 %v1225_v14 }
  0x7e   :  { %1143 = vmatpush3.bf16.msra.mxu0 %v1228_v17 }
  0x7f   :  { %1144 = vmatprep.subr.bf16.mxu0 %v1358_v43 }
  0x82   :  { %1145 = vmatpush3.bf16.msra.mxu0 %v1229_v18 }
  0x83   :  { %1146 = vmatprep.subr.bf16.mxu0 %v1358_v43 }
  0x86   :  { %1147 = vmatpush3.bf16.msra.mxu0 %v1230_v19 }
  0x87   :  { %1148 = vmatprep.subr.bf16.mxu0 %v1358_v43 }
  0x8a   :  { %1149 = vmatpush3.bf16.msra.mxu0 %v1231_v55 }
  0x8b   :  { %1150 = vmatprep.subr.bf16.mxu0 %v1358_v43 }
  0x8e   :  { %1151 = vmatpush3.bf16.msra.mxu0 %v1232_v56 }
  0x8f   :  { %1152 = vmatprep.subr.bf16.mxu0 %v1358_v43  ;;  %v1008_v43 = vld [vmem:[%s1466_s6] ss:$0 sm:$0xff]  ;;  %s934_s6 = sshll.u32 %s1360_s4, 4  ;;  %s935_s6 = int_to_ptr.vmem [resolvable:$true] %s934_s6 }
  0x90   :  { %s1322_s26 = scalar_lea.vmem %s935_s6, 128  ;;  %p1327_p7 = scmp.lt.s32.totalorder %s935_s6, %s935_s6 }
  0x91   :  { %p1323_p6 = scmp.ne.s32.totalorder %s935_s6, %s1322_s26  ;;  %p1328_p8 = scmp.lt.s32.totalorder %s1322_s26, %s1322_s26 }
  0x92   :  { %1153 = vmatpush3.bf16.msra.mxu0 %v1233_v57 }
  0x93   :  { %p1329_p9 = por %p1328_p8, %p1327_p7 }
  0x95   :  { %p1330_p10 = pnand %p1329_p9, %p1323_p6 }
 0x115   :  { %v1042_v23 = vpop.f32.mrf.mxu0 }
 0x117   :  { %v1064_v20 = vpop.f32.mrf.mxu1  ;;  %v1043_v25 = vpop.f32.mrf.mxu0 }
 0x118   :  { %v1044_v31 = vadd.f32 %v1043_v25, %v1042_v23 }
 0x119   :  { %v1065_v21 = vpop.f32.mrf.mxu1  ;;  %v1045_v28 = vpop.f32.mrf.mxu0 }
 0x11a   :  { %v542_v34 = vadd.f32 %v1044_v31, %v948_v32  ;;  %v1066_v35 = vadd.f32 %v1065_v21, %v1064_v20 }
 0x11b   :  { %v1067_v22 = vpop.f32.mrf.mxu1  ;;  %v1046_v33 = vpop.f32.mrf.mxu0 }
 0x11c   :  { %v1047_v36 = vadd.f32 %v1046_v33, %v1045_v28  ;;  %v583_v39 = vadd.f32 %v1066_v35, %v542_v34 }
 0x11d   :  { %v1068_v24 = vpop.f32.mrf.mxu1 }
 0x11e   :  { %v545_v40 = vadd.f32 %v1047_v36, %v948_v32  ;;  %v1069_v41 = vadd.f32 %v1068_v24, %v1067_v22 }
 0x11f   :  { %v664_v26 = vpop.f32.mrf.mxu1 }
 0x120   :  { %v586_v47 = vadd.f32 %v1069_v41, %v545_v40 }
 0x121   :  { %v1116_v27 = vpop.f32.mrf.mxu1 }
 0x123   :  { %v667_v29 = vpop.f32.mrf.mxu1 }
 0x125   :  { %v1117_v30 = vpop.f32.mrf.mxu1 }
 0x135   :  { %v1086_v37 = vpop.f32.mrf.mxu0 }
 0x137   :  { %v1087_v38 = vpop.f32.mrf.mxu0 }
 0x138   :  { %v1088_v42 = vadd.f32 %v1087_v38, %v1086_v37 }
 0x139   :  { %v1089_v44 = vpop.f32.mrf.mxu0 }
 0x13a   :  { %v624_v45 = vadd.f32 %v1088_v42, %v583_v39 }
 0x13b   :  { %v1090_v46 = vpop.f32.mrf.mxu0 }
 0x13c   :  { %v1091_v48 = vadd.f32 %v1090_v46, %v1089_v44  ;;  %v665_v49 = vadd.f32 %v664_v26, %v624_v45 }
 0x13e   :  { %v627_v50 = vadd.f32 %v1091_v48, %v586_v47  ;;  %v671_v52 = vmax.f32 %v665_v49, 0.0 }
 0x140   :  { %v668_v51 = vadd.f32 %v667_v29, %v627_v50 }
 0x142   :  { %v672_v53 = vmax.f32 %v668_v51, 0.0 }
 0x144   :  { %v673_v54 = vpack.c.bf16 %v672_v53, %v671_v52 }
 0x146   :  { %1135 = vmatmul.mubr.bf16.vlgmr.msra.gmra.mxu1 %v673_v54 }
 0x206   :  { %v779_v59 = vpop.f32.mrf.mxu1 }
 0x207   :  { %v780_v61 = vadd.f32 %v999_v58, %v779_v59 }
 0x208   :  { %v1136_v60 = vpop.f32.mrf.mxu1 }
 0x209   :  { %v786_v1 = vmax.f32 %v780_v61, 0.0 }
 0x20a   :  { %v782_v62 = vpop.f32.mrf.mxu1 }
 0x20b   :  { %v783_v63 = vadd.f32 %v999_v58, %v782_v62 }
 0x20c   :  { %v1137_v0 = vpop.f32.mrf.mxu1 }
 0x20d   :  { %v787_v2 = vmax.f32 %v783_v63, 0.0 }
 0x20f   :  { %v788_v3 = vpack.c.bf16 %v787_v2, %v786_v1 }
 0x211   :  { %1155 = vmatmul.mubr.bf16.vlgmr.msra.gmra.mxu0 %v788_v3 }
 0x2d1   :  { %v894_v4 = vpop.f32.mrf.mxu0 }
 0x2d2   :  { %v895_v5 = vadd.f32 %v1008_v43, %v894_v4 }
 0x2d3   :  { %v1156_v6 = vpop.f32.mrf.mxu0 }
 0x2d4   :  { %901 = vmax.xlane.f32.xlu0 %v895_v5 }
 0x2d5   :  { %v897_v7 = vpop.f32.mrf.mxu0 }
 0x2d6   :  { %v898_v8 = vadd.f32 %v1008_v43, %v897_v7 }
 0x2d7   :  { %v1157_v9 = vpop.f32.mrf.mxu0 }
 0x2d8   :  { %903 = vmax.xlane.f32.xlu0 %v898_v8 }
 0x35d   :  { %v902_v10 = vpop.xlane.xlu0 %901 }
 0x35e   :  { %v905_v11 = vsub.f32 %v895_v5, %v902_v10 }
 0x360   :  { %v907_v12 = vmul.f32 1.442695, %v905_v11 }
 0x361   :  { %v904_v13 = vpop.xlane.xlu0 %903 }
 0x362   :  { %1234 = vpow2.f32 %v907_v12  ;;  %v906_v14 = vsub.f32 %v898_v8, %v904_v13 }
 0x364   :  { %v909_v15 = vmul.f32 1.442695, %v906_v14 }
 0x366   :  { %1236 = vpow2.f32 %v909_v15 }
 0x36f   :  { %v1235_v16 = vpop.eup %1234 }
 0x370   :  { %911 = vadd.xlane.f32.xlu1 %v1235_v16 }
 0x373   :  { %v1237_v17 = vpop.eup %1236 }
 0x374   :  { %913 = vadd.xlane.f32.xlu1 %v1237_v17 }
 0x3f9   :  { %v912_v18 = vpop.xlane.xlu1 %911 }
 0x3fa   :  { %1238 = vrcp.f32 %v912_v18 }
 0x3fd   :  { %v914_v19 = vpop.xlane.xlu1 %913 }
 0x3fe   :  { %1240 = vrcp.f32 %v914_v19 }
 0x407   :  { %v1239_v20 = vpop.eup %1238 }
 0x408   :  { %v917_v22 = vmul.f32 %v1239_v20, %v1235_v16 }
 0x40b   :  { %v1241_v21 = vpop.eup %1240 }
 0x40c   :  { %v918_v23 = vmul.f32 %v1241_v21, %v1237_v17 }
 0x40e   :  { %v1024_v24 = vpack.c.bf16 %v918_v23, %v917_v22 }
 0x410   :  { %1025 = vst [vmem:[#allocation10] sm:$0xff] %v1024_v24  }
 0x411   :  { %1333 = shalt.err (!%p1330_p10)
}
 0x412   :  { %940 = dma.vmem_to_hbm [thread:$0]  %s935_s6, 128, %s1467_s7, [#allocation4], %s1351_s27, %s1351_s27, %s1352_s28  }
 0x413   :  { %1348 = dma.done.wait [#allocation4], 128  }
 0x414   :  { %1349 = vsyncadd [#allocation4], 4294967168 }
 0x415   :  { %944 = vsyncpa [#allocation3], 1 }
 0x416   :  { %945 = vsyncpa [#allocation6], 1 }
 0x417   :  { %946 = vsyncpa [#allocation9], 1 }
 0x418   :  { %947 = vsyncpa [#allocation4], 1 }

</bundles_post_ra>
